<compile_context>
chip_gen: v7x
topology: tpu7x:2x2x1
jax: 0.10.0
libtpu: 0.0.40
codegen_flags: <defaults>
</compile_context>

<pallas_src>
import functools

import jax
import jax.numpy as jnp
from jax import lax
from jax.experimental import pallas as pl
from jax.experimental.pallas import tpu as pltpu


def autopad(k, p=None):
    if p is None:
        p = k // 2 if isinstance(k, int) else [x // 2 for x in k]
    return p


def _round_up(x, m):
    return (x + m - 1) // m * m


def _vmem_limit_bytes():
    # Generation-aware scoped-VMEM limit: ~half of physical VMEM
    # (v7x: 64 MiB/TC -> 32 MiB; v5e/v6e: 128 MiB -> 64 MiB).
    try:
        cap = pltpu.get_tpu_info().vmem_capacity_bytes
    except Exception:  # conservative fallback
        cap = 64 * 1024 * 1024
    return max(16 * 1024 * 1024, min(cap // 2, 64 * 1024 * 1024))


# ---------------------------------------------------------------------------
# Pallas kernel: per-tap MXU matmuls (f32 accumulate) + BN(eval) + SiLU
# ---------------------------------------------------------------------------
def _conv_bn_silu_kernel(x_ref, w_ref, bn_ref, o_ref, *, k, s, TH, Wo):
    """One (image, output-row-tile) grid step.

    x_ref : (Hp, Wp, C1)    bf16  whole padded image (resident per image)
    w_ref : (k*k, C1, C2p)  bf16  conv weights, one (C1, C2p) slab per tap
    bn_ref: (2, C2p)        f32   row 0 = BN scale, row 1 = BN bias
    o_ref : (TH, Wo, C2p)   bf16  output row tile
    """
    j = pl.program_id(1)
    row0 = pl.multiple_of(j * (TH * s), TH * s)   # first padded-input row
    m = TH * Wo
    c2p = o_ref.shape[-1]

    def tap(kh, kw):
        # Strided window read straight from the bf16 ref: no f32 image copy,
        # no im2col concatenate; the load path handles the conv stride.
        if s == 1:
            sl = x_ref[pl.ds(row0 + kh, TH), pl.ds(kw, Wo), :]
        else:
            sl = x_ref[pl.ds(row0 + kh, TH, stride=s),
                       pl.ds(kw, Wo, stride=s), :]
        return sl.reshape(m, sl.shape[-1])

    acc = jnp.zeros((m, c2p), jnp.float32)
    for kh in range(k):                 # k*k partial MXU matmuls, f32 acc
        for kw in range(k):
            acc += jnp.dot(tap(kh, kw), w_ref[kh * k + kw],
                           preferred_element_type=jnp.float32)

    # BatchNorm (eval mode) applied to the f32 accumulator, then SiLU.
    y = acc * bn_ref[0:1, :] + bn_ref[1:2, :]
    y = y * jax.nn.sigmoid(y)
    o_ref[...] = y.reshape(TH, Wo, c2p).astype(o_ref.dtype)


@functools.partial(jax.jit, static_argnames=("k", "s", "p", "row_tile"))
def conv_bn_silu(x_nchw, weight, gamma, beta, running_mean, running_var,
                 *, k, s, p, eps=1e-5, row_tile=None):
    """Forward of Conv: SiLU(BN(conv2d(x))).  x is NCHW, weight is
    (c2, c1, k, k) (PyTorch OIHW), BN uses running stats (eval), g=1."""
    N, C1, H, W = x_nchw.shape
    C2 = weight.shape[0]
    Ho = (H + 2 * p - k) // s + 1
    Wo = (W + 2 * p - k) // s + 1

    # Output-row tile: bounds per-step VMEM / accumulator size and gives
    # multiple parallel grid steps per image for megacore sharding.
    if row_tile is None:
        row_tile = max(1, 1024 // max(Wo, 1))
    TH = max(1, min(row_tile, Ho))
    nT = -(-Ho // TH)
    Ho_pad = nT * TH

    # Output channels: keep exactly C2 for small layers (avoid up-to-16x
    # HBM write amplification); pad to a lane multiple only when waste < 2x.
    C2p = _round_up(C2, 128) if C2 >= 128 else C2

    # --- layout glue (NCHW -> padded bf16 NHWC) ------------------------------
    # TODO(synk): in a pure NHWC inference pipeline these boundary transposes
    # would be fused with neighbouring layers / dropped entirely.
    Hp_need = (Ho_pad - 1) * s + k
    Wp_need = (Wo - 1) * s + k
    pad_b = max(Hp_need - H - p, 0)
    pad_r = max(Wp_need - W - p, 0)
    x = jnp.transpose(x_nchw, (0, 2, 3, 1)).astype(jnp.bfloat16)
    x = jnp.pad(x, ((0, 0), (p, pad_b), (p, pad_r), (0, 0)))
    Hp, Wp = H + p + pad_b, W + p + pad_r

    # Weights (c2,c1,kh,kw) -> (k*k, c1, C2p) bf16.  BN scale is NOT folded
    # into the bf16 weights (better numerics: applied to the f32 accumulator).
    wt = jnp.transpose(weight, (2, 3, 1, 0))                   # (k,k,c1,c2)
    wt = jnp.pad(wt, ((0, 0), (0, 0), (0, 0), (0, C2p - C2)))
    w3 = wt.reshape(k * k, C1, C2p).astype(jnp.bfloat16)

    inv = gamma / jnp.sqrt(running_var + eps)
    bn = jnp.stack([inv, beta - running_mean * inv], axis=0)   # (2, c2)
    bn = jnp.pad(bn, ((0, 0), (0, C2p - C2))).astype(jnp.float32)

    kernel = functools.partial(_conv_bn_silu_kernel, k=k, s=s, TH=TH, Wo=Wo)

    out = pl.pallas_call(
        kernel,
        out_shape=jax.ShapeDtypeStruct((N, Ho_pad, Wo, C2p), jnp.bfloat16),
        grid=(N, nT),
        in_specs=[
            # Whole padded image per n; the block index is constant over the
            # row-tile axis, so the pipeline keeps it resident in VMEM.
            pl.BlockSpec((None, Hp, Wp, C1), lambda n, j: (n, 0, 0, 0)),
            # Constant index_maps: weights / BN vectors are fetched once and
            # re-used for the whole grid (tiny blocks, so the default
            # double-buffering costs only a few KB of VMEM).
            pl.BlockSpec((k * k, C1, C2p), lambda n, j: (0, 0, 0)),
            pl.BlockSpec((2, C2p), lambda n, j: (0, 0)),
        ],
        out_specs=pl.BlockSpec((None, TH, Wo, C2p), lambda n, j: (n, j, 0, 0)),
        compiler_params=pltpu.CompilerParams(
            dimension_semantics=("parallel", "parallel"),
            vmem_limit_bytes=_vmem_limit_bytes()),
        cost_estimate=pl.CostEstimate(
            flops=2 * N * Ho_pad * Wo * k * k * C1 * C2p,
            transcendentals=N * Ho_pad * Wo * C2p,
            bytes_accessed=(N * Hp * Wp * C1 * 2 + k * k * C1 * C2p * 2
                            + 2 * C2p * 4 + N * Ho_pad * Wo * C2p * 2)),
    )(x, w3, bn)

    out = out[:, :Ho, :, :C2].astype(x_nchw.dtype)
    return jnp.transpose(out, (0, 3, 1, 2))      # back to NCHW


def _reference(x_nchw, weight, gamma, beta, running_mean, running_var,
               *, k, s, p, eps=1e-5):
    """Plain-JAX reference (conv -> BN(eval) -> SiLU), NCHW, f32."""
    y = lax.conv_general_dilated(
        x_nchw, weight, window_strides=(s, s),
        padding=[(p, p), (p, p)],
        dimension_numbers=("NCHW", "OIHW", "NCHW"))
    inv = gamma / jnp.sqrt(running_var + eps)
    y = y * inv[None, :, None, None] + (beta - running_mean * inv)[None, :, None, None]
    return y * jax.nn.sigmoid(y)


if __name__ == "__main__":
    # Module config: Conv(c1=4, c2=8, k=3, s=1) -> p = autopad(3) = 1, g=1, SiLU
    c1, c2, k, s = 4, 8, 3, 1
    p = autopad(k)

    key = jax.random.PRNGKey(0)
    kx, kw, kg, kb, km, kv = jax.random.split(key, 6)

    x = jax.random.normal(kx, (2, c1, 16, 16), dtype=jnp.float32)          # NCHW
    weight = jax.random.normal(kw, (c2, c1, k, k), dtype=jnp.float32) * 0.1
    gamma = jax.random.normal(kg, (c2,), dtype=jnp.float32) * 0.1 + 1.0
    beta = jax.random.normal(kb, (c2,), dtype=jnp.float32) * 0.1
    running_mean = jax.random.normal(km, (c2,), dtype=jnp.float32) * 0.1
    running_var = jnp.abs(jax.random.normal(kv, (c2,), dtype=jnp.float32)) * 0.1 + 1.0

    # row_tile=4 -> 4 output-row tiles per image: exercises the M tiling path.
    out = conv_bn_silu(x, weight, gamma, beta, running_mean, running_var,
                       k=k, s=s, p=p, row_tile=4)
    out = jax.block_until_ready(out)

    ref = _reference(x, weight, gamma, beta, running_mean, running_var,
                     k=k, s=s, p=p)
    assert out.shape == (2, c2, 16, 16), out.shape
    # bf16 matmul inputs + bf16 output store (f32 accumulate / f32 epilogue)
    # -> loosened tolerance vs the f32 reference.
    assert jnp.allclose(out, ref, atol=3e-2, rtol=3e-2), \
        float(jnp.max(jnp.abs(out - ref)))

    print("KERNEL_OK")
</pallas_src>

<mosaic_0001>
module attributes {stable_mosaic.version = 11 : i64} {
  func.func @_conv_bn_silu_kernel(%arg0: i32, %arg1: i32, %arg2: memref<1x18x18x4xbf16, #tpu.memory_space<vmem>>, %arg3: memref<9x4x8xbf16, #tpu.memory_space<vmem>>, %arg4: memref<2x8xf32, #tpu.memory_space<vmem>>, %arg5: memref<1x4x16x8xbf16, #tpu.memory_space<vmem>>) attributes {dimension_semantics = [#tpu.dimension_semantics<parallel>, #tpu.dimension_semantics<parallel>], iteration_bounds = array<i64: 2, 4>, scalar_prefetch = 0 : i64, scratch_operands = 0 : i64, tpu.core_type = #tpu.core_type<tc>, window_params = [{transform_indices = @transform_0, window_bounds = array<i64: 1, 18, 18, 4>}, {pipeline_mode = #tpu.pipeline_mode<synchronous>, transform_indices = @transform_1, window_bounds = array<i64: 9, 4, 8>}, {pipeline_mode = #tpu.pipeline_mode<synchronous>, transform_indices = @transform_2, window_bounds = array<i64: 2, 8>}, {transform_indices = @transform_3, window_bounds = array<i64: 1, 4, 16, 8>}]} {
    %c4_i32 = arith.constant 4 : i32
    %0 = arith.muli %arg1, %c4_i32 : i32
    %1 = tpu.assume_multiple %0, 4 : i32
    %cst = arith.constant 0.000000e+00 : f32
    %2 = vector.broadcast %cst : f32 to vector<64x8xf32>
    %c0_i32 = arith.constant 0 : i32
    %3 = arith.addi %1, %c0_i32 : i32
    %c0 = arith.constant 0 : index
    %4 = arith.index_cast %3 : i32 to index
    %c0_0 = arith.constant 0 : index
    %c0_1 = arith.constant 0 : index
    %5 = vector.load %arg2[%c0, %4, %c0_0, %c0_1] : memref<1x18x18x4xbf16, #tpu.memory_space<vmem>>, vector<1x4x16x4xbf16>
    %6 = vector.shape_cast %5 : vector<1x4x16x4xbf16> to vector<4x16x4xbf16>
    %7 = vector.shape_cast %6 : vector<4x16x4xbf16> to vector<64x4xbf16>
    %c0_2 = arith.constant 0 : index
    %c0_3 = arith.constant 0 : index
    %c0_4 = arith.constant 0 : index
    %8 = vector.load %arg3[%c0_2, %c0_3, %c0_4] : memref<9x4x8xbf16, #tpu.memory_space<vmem>>, vector<1x4x8xbf16>
    %9 = vector.shape_cast %8 : vector<1x4x8xbf16> to vector<4x8xbf16>
    %cst_5 = arith.constant dense<0.000000e+00> : vector<64x8xf32>
    %10 = tpu.matmul %7, %9, %cst_5 {dimension_numbers = #tpu.dot_dimension_numbers<[1], [0], [0], [1], [0, 0, 1, 1], [], []>} : vector<64x4xbf16>, vector<4x8xbf16>, vector<64x8xf32> -> vector<64x8xf32>
    %11 = arith.addf %2, %10 : vector<64x8xf32>
    %c0_i32_6 = arith.constant 0 : i32
    %12 = arith.addi %1, %c0_i32_6 : i32
    %c0_7 = arith.constant 0 : index
    %13 = arith.index_cast %12 : i32 to index
    %c1 = arith.constant 1 : index
    %c0_8 = arith.constant 0 : index
    %14 = vector.load %arg2[%c0_7, %13, %c1, %c0_8] : memref<1x18x18x4xbf16, #tpu.memory_space<vmem>>, vector<1x4x16x4xbf16>
    %15 = vector.shape_cast %14 : vector<1x4x16x4xbf16> to vector<4x16x4xbf16>
    %16 = vector.shape_cast %15 : vector<4x16x4xbf16> to vector<64x4xbf16>
    %c1_9 = arith.constant 1 : index
    %c0_10 = arith.constant 0 : index
    %c0_11 = arith.constant 0 : index
    %17 = vector.load %arg3[%c1_9, %c0_10, %c0_11] : memref<9x4x8xbf16, #tpu.memory_space<vmem>>, vector<1x4x8xbf16>
    %18 = vector.shape_cast %17 : vector<1x4x8xbf16> to vector<4x8xbf16>
    %cst_12 = arith.constant dense<0.000000e+00> : vector<64x8xf32>
    %19 = tpu.matmul %16, %18, %cst_12 {dimension_numbers = #tpu.dot_dimension_numbers<[1], [0], [0], [1], [0, 0, 1, 1], [], []>} : vector<64x4xbf16>, vector<4x8xbf16>, vector<64x8xf32> -> vector<64x8xf32>
    %20 = arith.addf %11, %19 : vector<64x8xf32>
    %c0_i32_13 = arith.constant 0 : i32
    %21 = arith.addi %1, %c0_i32_13 : i32
    %c0_14 = arith.constant 0 : index
    %22 = arith.index_cast %21 : i32 to index
    %c2 = arith.constant 2 : index
    %c0_15 = arith.constant 0 : index
    %23 = vector.load %arg2[%c0_14, %22, %c2, %c0_15] : memref<1x18x18x4xbf16, #tpu.memory_space<vmem>>, vector<1x4x16x4xbf16>
    %24 = vector.shape_cast %23 : vector<1x4x16x4xbf16> to vector<4x16x4xbf16>
    %25 = vector.shape_cast %24 : vector<4x16x4xbf16> to vector<64x4xbf16>
    %c2_16 = arith.constant 2 : index
    %c0_17 = arith.constant 0 : index
    %c0_18 = arith.constant 0 : index
    %26 = vector.load %arg3[%c2_16, %c0_17, %c0_18] : memref<9x4x8xbf16, #tpu.memory_space<vmem>>, vector<1x4x8xbf16>
    %27 = vector.shape_cast %26 : vector<1x4x8xbf16> to vector<4x8xbf16>
    %cst_19 = arith.constant dense<0.000000e+00> : vector<64x8xf32>
    %28 = tpu.matmul %25, %27, %cst_19 {dimension_numbers = #tpu.dot_dimension_numbers<[1], [0], [0], [1], [0, 0, 1, 1], [], []>} : vector<64x4xbf16>, vector<4x8xbf16>, vector<64x8xf32> -> vector<64x8xf32>
    %29 = arith.addf %20, %28 : vector<64x8xf32>
    %c1_i32 = arith.constant 1 : i32
    %30 = arith.addi %1, %c1_i32 : i32
    %c0_20 = arith.constant 0 : index
    %31 = arith.index_cast %30 : i32 to index
    %c0_21 = arith.constant 0 : index
    %c0_22 = arith.constant 0 : index
    %32 = vector.load %arg2[%c0_20, %31, %c0_21, %c0_22] : memref<1x18x18x4xbf16, #tpu.memory_space<vmem>>, vector<1x4x16x4xbf16>
    %33 = vector.shape_cast %32 : vector<1x4x16x4xbf16> to vector<4x16x4xbf16>
    %34 = vector.shape_cast %33 : vector<4x16x4xbf16> to vector<64x4xbf16>
    %c3 = arith.constant 3 : index
    %c0_23 = arith.constant 0 : index
    %c0_24 = arith.constant 0 : index
    %35 = vector.load %arg3[%c3, %c0_23, %c0_24] : memref<9x4x8xbf16, #tpu.memory_space<vmem>>, vector<1x4x8xbf16>
    %36 = vector.shape_cast %35 : vector<1x4x8xbf16> to vector<4x8xbf16>
    %cst_25 = arith.constant dense<0.000000e+00> : vector<64x8xf32>
    %37 = tpu.matmul %34, %36, %cst_25 {dimension_numbers = #tpu.dot_dimension_numbers<[1], [0], [0], [1], [0, 0, 1, 1], [], []>} : vector<64x4xbf16>, vector<4x8xbf16>, vector<64x8xf32> -> vector<64x8xf32>
    %38 = arith.addf %29, %37 : vector<64x8xf32>
    %c1_i32_26 = arith.constant 1 : i32
    %39 = arith.addi %1, %c1_i32_26 : i32
    %c0_27 = arith.constant 0 : index
    %40 = arith.index_cast %39 : i32 to index
    %c1_28 = arith.constant 1 : index
    %c0_29 = arith.constant 0 : index
    %41 = vector.load %arg2[%c0_27, %40, %c1_28, %c0_29] : memref<1x18x18x4xbf16, #tpu.memory_space<vmem>>, vector<1x4x16x4xbf16>
    %42 = vector.shape_cast %41 : vector<1x4x16x4xbf16> to vector<4x16x4xbf16>
    %43 = vector.shape_cast %42 : vector<4x16x4xbf16> to vector<64x4xbf16>
    %c4 = arith.constant 4 : index
    %c0_30 = arith.constant 0 : index
    %c0_31 = arith.constant 0 : index
    %44 = vector.load %arg3[%c4, %c0_30, %c0_31] : memref<9x4x8xbf16, #tpu.memory_space<vmem>>, vector<1x4x8xbf16>
    %45 = vector.shape_cast %44 : vector<1x4x8xbf16> to vector<4x8xbf16>
    %cst_32 = arith.constant dense<0.000000e+00> : vector<64x8xf32>
    %46 = tpu.matmul %43, %45, %cst_32 {dimension_numbers = #tpu.dot_dimension_numbers<[1], [0], [0], [1], [0, 0, 1, 1], [], []>} : vector<64x4xbf16>, vector<4x8xbf16>, vector<64x8xf32> -> vector<64x8xf32>
    %47 = arith.addf %38, %46 : vector<64x8xf32>
    %c1_i32_33 = arith.constant 1 : i32
    %48 = arith.addi %1, %c1_i32_33 : i32
    %c0_34 = arith.constant 0 : index
    %49 = arith.index_cast %48 : i32 to index
    %c2_35 = arith.constant 2 : index
    %c0_36 = arith.constant 0 : index
    %50 = vector.load %arg2[%c0_34, %49, %c2_35, %c0_36] : memref<1x18x18x4xbf16, #tpu.memory_space<vmem>>, vector<1x4x16x4xbf16>
    %51 = vector.shape_cast %50 : vector<1x4x16x4xbf16> to vector<4x16x4xbf16>
    %52 = vector.shape_cast %51 : vector<4x16x4xbf16> to vector<64x4xbf16>
    %c5 = arith.constant 5 : index
    %c0_37 = arith.constant 0 : index
    %c0_38 = arith.constant 0 : index
    %53 = vector.load %arg3[%c5, %c0_37, %c0_38] : memref<9x4x8xbf16, #tpu.memory_space<vmem>>, vector<1x4x8xbf16>
    %54 = vector.shape_cast %53 : vector<1x4x8xbf16> to vector<4x8xbf16>
    %cst_39 = arith.constant dense<0.000000e+00> : vector<64x8xf32>
    %55 = tpu.matmul %52, %54, %cst_39 {dimension_numbers = #tpu.dot_dimension_numbers<[1], [0], [0], [1], [0, 0, 1, 1], [], []>} : vector<64x4xbf16>, vector<4x8xbf16>, vector<64x8xf32> -> vector<64x8xf32>
    %56 = arith.addf %47, %55 : vector<64x8xf32>
    %c2_i32 = arith.constant 2 : i32
    %57 = arith.addi %1, %c2_i32 : i32
    %c0_40 = arith.constant 0 : index
    %58 = arith.index_cast %57 : i32 to index
    %c0_41 = arith.constant 0 : index
    %c0_42 = arith.constant 0 : index
    %59 = vector.load %arg2[%c0_40, %58, %c0_41, %c0_42] : memref<1x18x18x4xbf16, #tpu.memory_space<vmem>>, vector<1x4x16x4xbf16>
    %60 = vector.shape_cast %59 : vector<1x4x16x4xbf16> to vector<4x16x4xbf16>
    %61 = vector.shape_cast %60 : vector<4x16x4xbf16> to vector<64x4xbf16>
    %c6 = arith.constant 6 : index
    %c0_43 = arith.constant 0 : index
    %c0_44 = arith.constant 0 : index
    %62 = vector.load %arg3[%c6, %c0_43, %c0_44] : memref<9x4x8xbf16, #tpu.memory_space<vmem>>, vector<1x4x8xbf16>
    %63 = vector.shape_cast %62 : vector<1x4x8xbf16> to vector<4x8xbf16>
    %cst_45 = arith.constant dense<0.000000e+00> : vector<64x8xf32>
    %64 = tpu.matmul %61, %63, %cst_45 {dimension_numbers = #tpu.dot_dimension_numbers<[1], [0], [0], [1], [0, 0, 1, 1], [], []>} : vector<64x4xbf16>, vector<4x8xbf16>, vector<64x8xf32> -> vector<64x8xf32>
    %65 = arith.addf %56, %64 : vector<64x8xf32>
    %c2_i32_46 = arith.constant 2 : i32
    %66 = arith.addi %1, %c2_i32_46 : i32
    %c0_47 = arith.constant 0 : index
    %67 = arith.index_cast %66 : i32 to index
    %c1_48 = arith.constant 1 : index
    %c0_49 = arith.constant 0 : index
    %68 = vector.load %arg2[%c0_47, %67, %c1_48, %c0_49] : memref<1x18x18x4xbf16, #tpu.memory_space<vmem>>, vector<1x4x16x4xbf16>
    %69 = vector.shape_cast %68 : vector<1x4x16x4xbf16> to vector<4x16x4xbf16>
    %70 = vector.shape_cast %69 : vector<4x16x4xbf16> to vector<64x4xbf16>
    %c7 = arith.constant 7 : index
    %c0_50 = arith.constant 0 : index
    %c0_51 = arith.constant 0 : index
    %71 = vector.load %arg3[%c7, %c0_50, %c0_51] : memref<9x4x8xbf16, #tpu.memory_space<vmem>>, vector<1x4x8xbf16>
    %72 = vector.shape_cast %71 : vector<1x4x8xbf16> to vector<4x8xbf16>
    %cst_52 = arith.constant dense<0.000000e+00> : vector<64x8xf32>
    %73 = tpu.matmul %70, %72, %cst_52 {dimension_numbers = #tpu.dot_dimension_numbers<[1], [0], [0], [1], [0, 0, 1, 1], [], []>} : vector<64x4xbf16>, vector<4x8xbf16>, vector<64x8xf32> -> vector<64x8xf32>
    %74 = arith.addf %65, %73 : vector<64x8xf32>
    %c2_i32_53 = arith.constant 2 : i32
    %75 = arith.addi %1, %c2_i32_53 : i32
    %c0_54 = arith.constant 0 : index
    %76 = arith.index_cast %75 : i32 to index
    %c2_55 = arith.constant 2 : index
    %c0_56 = arith.constant 0 : index
    %77 = vector.load %arg2[%c0_54, %76, %c2_55, %c0_56] : memref<1x18x18x4xbf16, #tpu.memory_space<vmem>>, vector<1x4x16x4xbf16>
    %78 = vector.shape_cast %77 : vector<1x4x16x4xbf16> to vector<4x16x4xbf16>
    %79 = vector.shape_cast %78 : vector<4x16x4xbf16> to vector<64x4xbf16>
    %c8 = arith.constant 8 : index
    %c0_57 = arith.constant 0 : index
    %c0_58 = arith.constant 0 : index
    %80 = vector.load %arg3[%c8, %c0_57, %c0_58] : memref<9x4x8xbf16, #tpu.memory_space<vmem>>, vector<1x4x8xbf16>
    %81 = vector.shape_cast %80 : vector<1x4x8xbf16> to vector<4x8xbf16>
    %cst_59 = arith.constant dense<0.000000e+00> : vector<64x8xf32>
    %82 = tpu.matmul %79, %81, %cst_59 {dimension_numbers = #tpu.dot_dimension_numbers<[1], [0], [0], [1], [0, 0, 1, 1], [], []>} : vector<64x4xbf16>, vector<4x8xbf16>, vector<64x8xf32> -> vector<64x8xf32>
    %83 = arith.addf %74, %82 : vector<64x8xf32>
    %c0_60 = arith.constant 0 : index
    %c0_61 = arith.constant 0 : index
    %84 = vector.load %arg4[%c0_60, %c0_61] : memref<2x8xf32, #tpu.memory_space<vmem>>, vector<1x8xf32>
    %85 = vector.broadcast %84 : vector<1x8xf32> to vector<64x8xf32>
    %86 = arith.mulf %83, %85 : vector<64x8xf32>
    %c1_62 = arith.constant 1 : index
    %c0_63 = arith.constant 0 : index
    %87 = vector.load %arg4[%c1_62, %c0_63] : memref<2x8xf32, #tpu.memory_space<vmem>>, vector<1x8xf32>
    %88 = vector.broadcast %87 : vector<1x8xf32> to vector<64x8xf32>
    %89 = arith.addf %86, %88 : vector<64x8xf32>
    %90 = arith.negf %89 : vector<64x8xf32>
    %91 = math.exp %90 : vector<64x8xf32>
    %cst_64 = arith.constant 1.000000e+00 : f32
    %92 = vector.broadcast %cst_64 : f32 to vector<64x8xf32>
    %93 = arith.addf %92, %91 : vector<64x8xf32>
    %94 = arith.divf %92, %93 : vector<64x8xf32>
    %95 = arith.mulf %89, %94 : vector<64x8xf32>
    %96 = vector.shape_cast %95 : vector<64x8xf32> to vector<4x16x8xf32>
    %97 = arith.truncf %96 : vector<4x16x8xf32> to vector<4x16x8xbf16>
    %c0_65 = arith.constant 0 : index
    %c0_66 = arith.constant 0 : index
    %c0_67 = arith.constant 0 : index
    %c0_68 = arith.constant 0 : index
    %98 = vector.load %arg5[%c0_65, %c0_66, %c0_67, %c0_68] : memref<1x4x16x8xbf16, #tpu.memory_space<vmem>>, vector<1x4x16x8xbf16>
    %99 = vector.shape_cast %98 : vector<1x4x16x8xbf16> to vector<4x16x8xbf16>
    %100 = vector.shape_cast %97 : vector<4x16x8xbf16> to vector<1x4x16x8xbf16>
    tpu.vector_store %arg5[%c0_65, %c0_66, %c0_67, %c0_68], %100 {strides = array<i32>} : memref<1x4x16x8xbf16, #tpu.memory_space<vmem>>, vector<1x4x16x8xbf16>,
    return
  }
  func.func @transform_0(%arg0: i32, %arg1: i32) -> (i32, i32, i32, i32) {
    %c0_i32 = arith.constant 0 : i32
    %c0_i32_0 = arith.constant 0 : i32
    %c0_i32_1 = arith.constant 0 : i32
    %c0_i32_2 = arith.constant 0 : i32
    return %arg0, %c0_i32, %c0_i32_0, %c0_i32_1 : i32, i32, i32, i32
  }
  func.func @transform_1(%arg0: i32, %arg1: i32) -> (i32, i32, i32) {
    %c0_i32 = arith.constant 0 : i32
    %c0_i32_0 = arith.constant 0 : i32
    %c0_i32_1 = arith.constant 0 : i32
    %c0_i32_2 = arith.constant 0 : i32
    return %c0_i32, %c0_i32_0, %c0_i32_1 : i32, i32, i32
  }
  func.func @transform_2(%arg0: i32, %arg1: i32) -> (i32, i32) {
    %c0_i32 = arith.constant 0 : i32
    %c0_i32_0 = arith.constant 0 : i32
    %c0_i32_1 = arith.constant 0 : i32
    return %c0_i32, %c0_i32_0 : i32, i32
  }
  func.func @transform_3(%arg0: i32, %arg1: i32) -> (i32, i32, i32, i32) {
    %c0_i32 = arith.constant 0 : i32
    %c0_i32_0 = arith.constant 0 : i32
    %c0_i32_1 = arith.constant 0 : i32
    return %arg0, %arg1, %c0_i32, %c0_i32_0 : i32, i32, i32, i32
  }
}

</mosaic_0001>

<bundles_post_ra>
// kernel: conv_bn_silu.1
= control target key start
LH: loop header
LB: loop body
LE: loop exit
PB: predicated region body
PF: predicated region fallthrough
CT: control target
= control target key end

     0   :  { %s2375_s12 = smov 0   ;;  %s2377_s13 = smov 0   ;;  %s2915_s0 = inlined_call_operand.vmem [shape: bf16[2,18,18,4], index: 0, kind: input, shape index: {}]   ;;  %s2916_s1 = inlined_call_operand.vmem [shape: bf16[9,4,8], index: 1, kind: input, shape index: {}]   ;;  %s2917_s2 = inlined_call_operand.vmem [shape: f32[2,8], index: 2, kind: input, shape index: {}]   ;;  %s2918_s3 = inlined_call_operand.vmem [shape: bf16[2,16,16,8], index: 3, kind: output, shape index: {}]  }
   0x1   :  { %s2379_s14 = smov 0   ;;  %s2381_s15 = smov 0  }
   0x2   :  { %s2383_s16 = smov 0  }
   0x3 LB: > { %s22_s17 = sadd.s32 1, %s2345_s14  ;;  %s25_s18 = sadd.s32 1, %s2349_s15  ;;  %s2353_s16 = sphi %s2383_s16, %s13_s16   ;;  %s2349_s15 = sphi %s2381_s15, %s2926_s15   ;;  %s2345_s14 = sphi %s2379_s14, %s2925_s14   ;;  %s2341_s13 = sphi %s2377_s13, %s2924_s13   ;;  %s2337_s12 = sphi %s2375_s12, %s2923_s12  }
   0x4   : > { %p23_p0 = scmp.ge.s32.totalorder %s22_s17, 4  ;;  %p1837_p1 = scmp.ge.s32.totalorder %s2353_s16, 1 }
   0x5   : > { %p151_p2 = scmp.lt.s32.totalorder %s2353_s16, 9 }
   0x6   : > { %s2928_s17 = smov (%p23_p0, %s22_s17), 0  ;;  %s2930_s18 = smov (!%p23_p0, %s25_s18), %s2349_s15 }
   0x7   : > { %p152_p3 = pnand %p1837_p1, %p151_p2  ;;  %p27_p4 = scmp.ge.s32.totalorder %s2930_s18, 2 }
   0x8   : > { %v1846_v0 = vld [vmem:[%s2916_s1 + $0x2] sm:$0x3] (!%p152_p3)  ;;  %vm340_vm0 = vcmask (!%p152_p3), 1041408   ;;  %v2413_v1 = vld [vmem:[%s2916_s1 + $0x8] sm:$0x3] (!%p152_p3)  ;;  %p180_p5 = scmp.lt.s32.totalorder (!%p152_p3), %s2341_s13, 1 }
   0x9   : > { %s2932_s18 = smov (%p27_p4, %s2930_s18), 0  ;;  %155 = sbr.rel (%p152_p3) target bundleno = 367 (0x16f), region = 32 }
   0xa   : > { %2220 = vmatprep.subr.msk.bf16.mxu1 (!%p152_p3), %vm340_vm0, %v1846_v0  ;;  %2224 = vmatprep.subr.msk.bf16.mxu0 (!%p152_p3), %vm340_vm0, %v2413_v1  ;;  %v342_v2 = vsel (!%p152_p3), %vm340_vm0, %v1846_v0, 0  ;;  %v2421_v3 = vsel (!%p152_p3), %vm340_vm0, %v2413_v1, 0  ;;  %v209_v4 = vld [vmem:[%s2916_s1] sm:$0x3] (!%p152_p3)  ;;  %s2010_s25 = smul.u32 (!%p152_p3), 48, %s2337_s12  ;;  %vm327_vm3 = vcmask (!%p152_p3), 31744  }
   0xb   : > { %2065 = vmatpush3.bf16.msra.mxu1 (!%p152_p3), %v342_v2  ;;  %2105 = vmatpush3.bf16.msra.mxu0 (!%p152_p3), %v2421_v3  ;;  %v1924_v5 = vld [vmem:[%s2916_s1 + $0xa] sm:$0x3] (!%p152_p3)  ;;  %vm214_vm1 = vsmask.f32 (!%p152_p3), 3328  ;;  %vm215_vm2 = vsmask.f32 (!%p152_p3), 7440 }
   0xc   : > { %2221 = vmatprep.subr.msk.bf16.mxu1 (!%p152_p3), %vm340_vm0, %v209_v4  ;;  %2226 = vmatprep.subr.msk.bf16.mxu0 (!%p152_p3), %vm340_vm0, %v1924_v5  ;;  %vm2470_vm4 = vmor (!%p152_p3), %vm214_vm1, %vm215_vm2  ;;  %v2478_v35 = vsel (!%p152_p3), %vm340_vm0, %v209_v4, 0  ;;  %v2481_v39 = vsel (!%p152_p3), %vm340_vm0, %v1924_v5, 0  ;;  %vm521_vm5 = vcmask (!%p152_p3), 1042432   ;;  %vm522_vm6 = vcmask (!%p152_p3), 1046532   ;;  %v1990_v30 = vld [vmem:[%s2917_s2] ss:$0 sm:$0xff] (!%p152_p3) }
   0xd   : > { %vm2563_vm7 = vmor (!%p152_p3), %vm521_vm5, %vm522_vm6  ;;  %s1839_s27 = sshll.u32 (!%p152_p3), %s2337_s12, 2  ;;  %vm1724_vm8 = vcmask (!%p152_p3), 60416  }
   0xe   : > { %p188_p6 = scmp.lt.s32.totalorder (!%p152_p3), %s1839_s27, 15 }
  0x10   : > { %s2934_s13 = smov (!%p180_p5, %s2341_s13), 1  ;;  %s2936_s27 = smov (!%p188_p6, %s1839_s27), 15 }
  0x11   : > { %s2230_s28 = smul.u32 216, %s2934_s13  ;;  %s1840_s12 = sshll.u32 %s2936_s27, 1 }
  0x13   : > { %s184_s4 = scalar_lea.vmem %s2915_s0, %s2230_s28  ;;  %s1841_s28 = sshll.u32 %s2934_s13, 5 }
  0x14   : > { %s2439_s5 = scalar_lea.vmem %s184_s4, %s2010_s25  ;;  %s192_s29 = sadd.s32 %s1841_s28, %s1840_s12 }
  0x15   : > { %v2442_v6 = vld [vmem:[%s2439_s5] sm:$0xf]  ;;  %v2445_v7 = vld [vmem:[%s2439_s5 + $0x4] sm:$0xf]  ;;  %v2448_v8 = vld [vmem:[%s2439_s5 + $0x8] sm:$0x1] }
  0x16   : > { %v218_v9 = vshrl.u32 %v2442_v6, 16  ;;  %v221_v10 = vshll.u32 %v2442_v6, 16  ;;  %v227_v11 = vshll.u32 %v2445_v7, 16  ;;  %v231_v12 = vshrl.u32 %v2445_v7, 16  ;;  %v1895_v13 = vld [vmem:[%s2439_s5 + $0xc] sm:$0xf] }
  0x17   : > { %v237_v14 = vshll.u32 %v2448_v8, 16  ;;  %v2457_v15 = vld [vmem:[%s2439_s5 + $0x10] sm:$0xf]  ;;  %v2460_v16 = vld [vmem:[%s2439_s5 + $0x14] sm:$0x1]  ;;  %v789_v22 = vshrl.u32 %v1895_v13, 16 }
  0x18   : > { %v220_v17 = vrot.slane %v218_v9, 4  ;;  %v223_v18 = vrot.slane %v221_v10, 5  ;;  %v229_v19 = vrot.slane %v227_v11, 5  ;;  %v233_v20 = vrot.slane %v231_v12, 4  ;;  %v2466_v29 = vld [vmem:[%s2439_s5 + $0xc] sm:$0xf] }
  0x19   : > { %v239_v21 = vrot.slane %v237_v14, 5  ;;  %v792_v23 = vshll.u32 %v1895_v13, 16  ;;  %v798_v24 = vshll.u32 %v2457_v15, 16  ;;  %v802_v27 = vshrl.u32 %v2457_v15, 16  ;;  %v2475_v34 = vld [vmem:[%s2439_s5 + $0x10] sm:$0xf] }
  0x1a   : > { %v224_v25 = vor.u32 %v223_v18, %v220_v17  ;;  %v234_v26 = vor.u32 %v233_v20, %v229_v19  ;;  %v808_v28 = vshll.u32 %v2460_v16, 16  ;;  %v791_v31 = vrot.slane %v789_v22, 4  ;;  %v2484_v42 = vld [vmem:[%s2439_s5 + $0x14] sm:$0x1]  ;;  %v1898_v53 = vld [vmem:[%s2439_s5 + $0x18] sm:$0xf] }
  0x1b   : > { %v794_v32 = vrot.slane %v792_v23, 5  ;;  %v800_v33 = vrot.slane %v798_v24, 5  ;;  %v804_v38 = vrot.slane %v802_v27, 4  ;;  %v242_v43 = vshrl.u32 %v2466_v29, 16  ;;  %v2497_v58 = vld [vmem:[%s2439_s5 + $0x1c] sm:$0xf] }
  0x1c   : > { %v225_v36 = vrot.slane %v224_v25, 4  ;;  %v235_v37 = vrot.slane %v234_v26, 4  ;;  %v810_v41 = vrot.slane %v808_v28, 5  ;;  %v245_v44 = vshll.u32 %v2466_v29, 16  ;;  %v2505_v63 = vld [vmem:[%s2439_s5 + $0x20] sm:$0x1] }
  0x1d   : > { %v795_v40 = vor.u32 %v794_v32, %v791_v31  ;;  %v805_v47 = vor.u32 %v804_v38, %v800_v33  ;;  %v251_v48 = vshll.u32 %v2475_v34, 16  ;;  %v244_v51 = vrot.slane %v242_v43, 4  ;;  %v2511_v13 = vld [vmem:[%s2439_s5 + $0x18] sm:$0xf]  ;;  %v2516_v20 = vld [vmem:[%s2439_s5 + $0x1c] sm:$0xf] }
  0x1e   : > { %v230_v45 = vsel %vm2470_vm4, %v225_v36, %v229_v19  ;;  %v240_v46 = vsel %vm2470_vm4, %v235_v37, %v239_v21  ;;  %v247_v52 = vrot.slane %v245_v44, 5  ;;  %v255_v56 = vshrl.u32 %v2475_v34, 16  ;;  %v2523_v25 = vld [vmem:[%s2439_s5 + $0x20] sm:$0x1]  ;;  %v2530_v38 = vld [vmem:[%s2439_s5 + $0x24] sm:$0xf] }
  0x1f   : > { %v1847_v49 = vcombine.low %v230_v45, %v240_v46  ;;  %v796_v50 = vrot.slane %v795_v40, 4  ;;  %v806_v54 = vrot.slane %v805_v47, 4  ;;  %v253_v55 = vrot.slane %v251_v48, 5  ;;  %v2536_v45 = vld [vmem:[%s2439_s5 + $0x28] sm:$0xf]  ;;  %s1842_s30 = sshll.u32 %s192_s29, 2 }
  0x20   : > { %v261_v57 = vshll.u32 %v2484_v42, 16  ;;  %v1004_v60 = vrot.slane %v2457_v15, 5  ;;  %v1007_v61 = vrot.slane %v2460_v16, 5  ;;  %v248_v62 = vor.u32 %v247_v52, %v244_v51  ;;  %v2541_v46 = vld [vmem:[%s2916_s1 + $0x4] sm:$0x3] }
  0x21   : > { %2066 = vmatprep.mubr.msk.bf16.mxu1 %vm327_vm3, %v1847_v49  ;;  %v801_v59 = vsel %vm2470_vm4, %v796_v50, %v800_v33  ;;  %v811_v0 = vsel %vm2470_vm4, %v806_v54, %v810_v41  ;;  %v257_v2 = vrot.slane %v255_v56, 4  ;;  %v813_v5 = vshrl.u32 %v1898_v53, 16  ;;  %v2544_v51 = vld [vmem:[%s2439_s5 + $0x2c] sm:$0x1] }
  0x22   : > { %v263_v4 = vrot.slane %v261_v57, 5  ;;  %v1908_v9 = vcombine.low %v801_v59, %v811_v0  ;;  %v249_v10 = vrot.slane %v248_v62, 4  ;;  %v816_v11 = vshll.u32 %v1898_v53, 16  ;;  %v1916_v0 = vld [vmem:[%s2439_s5 + $0xc] sm:$0xe] }
  0x23   : > { %v822_v12 = vshll.u32 %v2497_v58, 16  ;;  %v258_v14 = vor.u32 %v257_v2, %v253_v55  ;;  %v815_v17 = vrot.slane %v813_v5, 4  ;;  %v826_v18 = vshrl.u32 %v2497_v58, 16 }
  0x24   : > { %v832_v19 = vshll.u32 %v2505_v63, 16  ;;  %2106 = vmatprep.mubr.msk.bf16.mxu0 %vm327_vm3, %v1908_v9  ;;  %v254_v21 = vsel %vm2470_vm4, %v249_v10, %v253_v55  ;;  %v818_v22 = vrot.slane %v816_v11, 5  ;;  %v1014_v24 = vrot.slane %v2505_v63, 5  ;;  %v1943_v10 = vld [vmem:[%s2916_s1 + $0xc] sm:$0x3] }
  0x25   : > { %v824_v23 = vrot.slane %v822_v12, 5  ;;  %v259_v26 = vrot.slane %v258_v14, 4  ;;  %v828_v27 = vrot.slane %v826_v18, 4  ;;  %v266_v31 = vshrl.u32 %v2511_v13, 16  ;;  %v1917_v11 = vld [vmem:[%s2439_s5 + $0x18] sm:$0xe] }
  0x26   : > { %v834_v28 = vrot.slane %v832_v19, 5  ;;  %v819_v32 = vor.u32 %v818_v22, %v815_v17  ;;  %v269_v33 = vshll.u32 %v2511_v13, 16  ;;  %v275_v36 = vshll.u32 %v2516_v20, 16  ;;  %v1964_v63 = vld [vmem:[%s2916_s1 + $0xe] sm:$0x3] }
  0x27   : > { %v279_v37 = vshrl.u32 %v2516_v20, 16  ;;  %v264_v40 = vsel %vm2470_vm4, %v259_v26, %v263_v4  ;;  %v829_v41 = vor.u32 %v828_v27, %v824_v23  ;;  %v268_v43 = vrot.slane %v266_v31, 4 }
  0x28   : > { %v285_v44 = vshll.u32 %v2523_v25, 16  ;;  %v1848_v47 = vcombine.low %v254_v21, %v264_v40  ;;  %v820_v48 = vrot.slane %v819_v32, 4  ;;  %v271_v49 = vrot.slane %v269_v33, 5  ;;  %v1918_v32 = vld [vmem:[%s2439_s5 + $0x24] sm:$0xe] }
  0x29   : > { %v277_v50 = vrot.slane %v275_v36, 5  ;;  %v830_v52 = vrot.slane %v829_v41, 4  ;;  %v281_v53 = vrot.slane %v279_v37, 4  ;;  %v290_v55 = vshrl.u32 %v2530_v38, 16  ;;  %v2584_v41 = vld [vmem:[%s2439_s5 + $0x28] sm:$0xf] }
  0x2a   : > { %v287_v54 = vrot.slane %v285_v44, 5  ;;  %2067 = vmatmul.mubr.msk.bf16.vlgmr.msra.gmra.mrb[0].mxu1 %vm327_vm3, %v1848_v47  ;;  %v825_v56 = vsel %vm2470_vm4, %v820_v48, %v824_v23  ;;  %v272_v57 = vor.u32 %v271_v49, %v268_v43  ;;  %v293_v59 = vshll.u32 %v2530_v38, 16  ;;  %v2593_v48 = vld [vmem:[%s2439_s5 + $0x2c] sm:$0x1] }
  0x2b   : > { %v299_v62 = vshll.u32 %v2536_v45, 16  ;;  %2075 = vmatpush3.bf16.msra.mxu1 %v2478_v35  ;;  %v835_v2 = vsel %vm2470_vm4, %v830_v52, %v834_v28  ;;  %v282_v4 = vor.u32 %v281_v53, %v277_v50  ;;  %v292_v5 = vrot.slane %v290_v55, 4  ;;  %v2603_v53 = vld [vmem:[%s2439_s5 + $0x38] sm:$0x1]  ;;  %v1991_v35 = vld [vmem:[%s2917_s2 + $0x1] ss:$0 sm:$0xff] }
  0x2c   : > { %v303_v9 = vshrl.u32 %v2536_v45, 16  ;;  %v1909_v12 = vcombine.low %v825_v56, %v835_v2  ;;  %v273_v14 = vrot.slane %v272_v57, 4  ;;  %v295_v17 = vrot.slane %v293_v59, 5  ;;  %2222 = vmatprep.subr.msk.bf16.mxu1 %vm340_vm0, %v2541_v46  ;;  %v1919_v57 = vld [vmem:[%s2439_s5 + $0x30] sm:$0xe] }
  0x2d   : > { %v301_v18 = vrot.slane %v299_v62, 5  ;;  %v283_v19 = vrot.slane %v282_v4, 4  ;;  %v309_v22 = vshll.u32 %v2544_v51, 16  ;;  %v1920_v23 = vrot.slane %v1916_v0, 9 }
  0x2e   : > { %v305_v21 = vrot.slane %v303_v9, 4  ;;  %2107 = vmatmul.mubr.msk.bf16.vlgmr.msra.gmra.mrb[0].mxu0 %vm327_vm3, %v1909_v12  ;;  %v278_v26 = vsel %vm2470_vm4, %v273_v14, %v277_v50  ;;  %v296_v27 = vor.u32 %v295_v17, %v292_v5  ;;  %v1006_v28 = vrot.slane %v1004_v60, 4  ;;  %v2596_v50 = vld [vmem:[%s2439_s5 + $0x34] sm:$0xf] }
  0x2f   : > { %v1921_v31 = vrot.slane %v1917_v11, 9  ;;  %2115 = vmatpush3.bf16.msra.mxu0 %v2481_v39  ;;  %v288_v33 = vsel %vm2470_vm4, %v283_v19, %v287_v54  ;;  %v311_v37 = vrot.slane %v309_v22, 5  ;;  %v1005_v40 = vsel %vm2563_vm7, %v1920_v23, %v1004_v60  ;;  %v509_v19 = vld [vmem:[%s2439_s5] sm:$0xe] }
  0x30   : > { %v306_v36 = vor.u32 %v305_v21, %v301_v18  ;;  %v1849_v43 = vcombine.low %v278_v26, %v288_v33  ;;  %v297_v44 = vrot.slane %v296_v27, 4  ;;  %v1008_v39 = vsel %vm2563_vm7, %v1006_v28, %v1007_v61  ;;  %2227 = vmatprep.subr.msk.bf16.mxu0 %vm340_vm0, %v1943_v10  ;;  %v1952_v27 = vld [vmem:[%s2439_s5 + $0x18] sm:$0xf] }
  0x31   : > { %v1011_v47 = vrot.slane %v2497_v58, 5  ;;  %v1925_v49 = vcombine.low %v1005_v40, %v1008_v39  ;;  %v1922_v60 = vrot.slane %v1918_v32, 9  ;;  %v1018_v61 = vrot.slane %v2584_v41, 5 }
  0x32   : > { %v307_v15 = vrot.slane %v306_v36, 4  ;;  %2070 = vmatprep.mubr.msk.bf16.mxu1 %vm327_vm3, %v1849_v43  ;;  %v302_v16 = vsel %vm2470_vm4, %v297_v44, %v301_v18  ;;  %v1855_v55 = vcombine.low %v2442_v6, %v2445_v7  ;;  %v1021_v56 = vrot.slane %v2593_v48, 5  ;;  %v2660_v36 = vld [vmem:[%s2439_s5 + $0x1c] sm:$0xf] }
  0x33   : > { %v1013_v52 = vrot.slane %v1011_v47, 4  ;;  %2116 = vmatprep.mubr.msk.bf16.mxu0 %vm327_vm3, %v1925_v49  ;;  %v1012_v54 = vsel %vm2563_vm7, %v1921_v31, %v1011_v47  ;;  %v1019_v0 = vsel %vm2563_vm7, %v1922_v60, %v1018_v61  ;;  %v1020_v2 = vrot.slane %v1018_v61, 4 }
  0x34   : > { %v312_v58 = vsel %vm2470_vm4, %v307_v15, %v311_v37  ;;  %v1025_v5 = vrot.slane %v2596_v50, 5  ;;  %v1923_v11 = vrot.slane %v1919_v57, 9  ;;  %v1028_v12 = vrot.slane %v2603_v53, 5  ;;  %v1955_v15 = vld [vmem:[%s2439_s5 + $0x24] sm:$0xf] }
  0x35   : > { %v1850_v59 = vcombine.low %v302_v16, %v312_v58  ;;  %v1015_v62 = vsel %vm2563_vm7, %v1013_v52, %v1014_v24  ;;  %v1022_v6 = vsel %vm2563_vm7, %v1020_v2, %v1021_v56  ;;  %v1886_v24 = vld [vmem:[%s2916_s1 + $0x6] sm:$0x3]  ;;  %v1179_v14 = vsel %vm340_vm0, %v1943_v10, 0  ;;  %v2677_v52 = vld [vmem:[%s2439_s5 + $0x20] sm:$0x1] }
  0x36   : > { %v1926_v4 = vcombine.low %v1012_v54, %v1015_v62  ;;  %v1927_v9 = vcombine.low %v1019_v0, %v1022_v6  ;;  %v579_v17 = vsel %vm340_vm0, %v2541_v46, 0  ;;  %v1027_v18 = vrot.slane %v1025_v5, 4  ;;  %v510_v46 = vld [vmem:[%s2439_s5 + $0xc] sm:$0xe]  ;;  %v2674_v16 = vld [vmem:[%s2439_s5 + $0x24] sm:$0xe] }
  0x37   : > { %2071 = vmatmul.mubr.msk.bf16.gmra.mrb[4].mxu1 %vm327_vm3, %v1850_v59  ;;  %v533_v21 = vrot.slane %v2475_v34, 5  ;;  %v2638_v22 = vsel %vm340_vm0, %v1964_v63, 0  ;;  %v526_v23 = vrot.slane %v2445_v7, 5  ;;  %v2642_v26 = vsel %vm340_vm0, %v1886_v24, 0  ;;  %v2685_v56 = vld [vmem:[%s2439_s5 + $0x28] sm:$0xf] }
  0x38   : > { %2076 = vmatprep.mubr.msk.bf16.mxu1 %vm327_vm3, %v1855_v55  ;;  %v1856_v10 = vcombine.low %v2466_v29, %v2475_v34  ;;  %v1026_v28 = vsel %vm2563_vm7, %v1923_v11, %v1025_v5  ;;  %v1029_v7 = vsel %vm2563_vm7, %v1027_v18, %v1028_v12  ;;  %v1857_v31 = vcombine.low %v2511_v13, %v2516_v20  ;;  %v511_v34 = vld [vmem:[%s2439_s5 + $0x18] sm:$0xe]  ;;  %v1958_v0 = vld [vmem:[%s2439_s5 + $0x30] sm:$0xf]  ;;  %v2706_v18 = vld [vmem:[%s2439_s5 + $0x34] sm:$0xf] }
  0x39   : > { %v1863_v32 = vrot.slane %v509_v19, 9  ;;  %v529_v33 = vrot.slane %v2448_v8, 5  ;;  %v528_v29 = vrot.slane %v526_v23, 4  ;;  %v536_v37 = vrot.slane %v2484_v42, 5  ;;  %v2275_v42 = vld [vmem:[%s2439_s5 + $0x18] sm:$0xff]  }
  0x3a   : > { %2117 = vmatmul.mubr.msk.bf16.vlgmr.msra.gmra.mrb[0].mxu0 %vm327_vm3, %v1926_v4  ;;  %v1858_v40 = vcombine.low %v2530_v38, %v2536_v45  ;;  %v1864_v43 = vrot.slane %v510_v46, 9  ;;  %v535_v13 = vrot.slane %v533_v21, 4  ;;  %v1928_v44 = vcombine.low %v1026_v28, %v1029_v7 }
  0x3b   : > { %2125 = vmatpush3.bf16.msra.mxu0 %v1179_v14  ;;  %2120 = vmatprep.mubr.msk.bf16.mxu0 %vm327_vm3, %v1927_v9  ;;  %v540_v8 = vrot.slane %v2516_v20, 5  ;;  %v1267_v39 = vshrl.u32 %v1952_v27, 16  ;;  %v1270_v47 = vshll.u32 %v1952_v27, 16  ;;  %v527_v49 = vsel %vm2563_vm7, %v1863_v32, %v526_v23  ;;  %v2276_v27 = vld [vmem:[%s2439_s5 + $0x24] sm:$0xff]  }
  0x3c   : > { %2228 = vmatprep.subr.msk.bf16.mxu0 %vm340_vm0, %v1964_v63  ;;  %v1865_v38 = vrot.slane %v511_v34, 9  ;;  %v543_v60 = vrot.slane %v2523_v25, 5  ;;  %v1276_v20 = vshll.u32 %v2660_v36, 16  ;;  %v530_v61 = vsel %vm2563_vm7, %v528_v29, %v529_v33  ;;  %v2277_v29 = vld [vmem:[%s2439_s5 + $0x30] sm:$0xff]  }
  0x3d   : > { %v1269_v58 = vrot.slane %v1267_v39, 4  ;;  %v1272_v54 = vrot.slane %v1270_v47, 5  ;;  %v1280_v55 = vshrl.u32 %v2660_v36, 16  ;;  %v2689_v25 = vsel %vm2563_vm7, %v1864_v43, %v533_v21  ;;  %v1961_v43 = vld [vmem:[%s2439_s5 + $0x3c] sm:$0xf] }
  0x3e   : > { %v2691_v57 = vrot.slane %v1276_v20, 5  ;;  %v1291_v59 = vshrl.u32 %v1955_v15, 16  ;;  %v1294_v62 = vshll.u32 %v1955_v15, 16  ;;  %v537_v2 = vsel %vm2563_vm7, %v535_v13, %v536_v37  ;;  %v2726_v47 = vld [vmem:[%s2439_s5 + $0x40] sm:$0xf] }
  0x3f   : > { %2077 = vmatmul.mubr.msk.bf16.vlgmr.msra.gmra.mrb[0].mxu1 %vm327_vm3, %v1856_v10  ;;  %v542_v4 = vrot.slane %v540_v8, 4  ;;  %v1273_v6 = vor.u32 %v1272_v54, %v1269_v58  ;;  %v1282_v5 = vrot.slane %v1280_v55, 4  ;;  %v1868_v63 = vcombine.low %v527_v49, %v530_v61  ;;  %v2731_v49 = vld [vmem:[%s2916_s1 + $0x10] sm:$0x3] }
  0x40   : > { %2085 = vmatpush3.bf16.msra.mxu1 %v579_v17  ;;  %2080 = vmatprep.mubr.msk.bf16.mxu1 %vm327_vm3, %v1857_v31  ;;  %v1300_v9 = vshll.u32 %v2685_v56, 16  ;;  %v1304_v11 = vshrl.u32 %v2685_v56, 16  ;;  %v541_v12 = vsel %vm2563_vm7, %v1865_v38, %v540_v8  ;;  %v1866_v14 = vrot.slane %v2674_v16, 9  ;;  %v2714_v31 = vld [vmem:[%s2439_s5 + $0x2c] sm:$0x1] }
  0x41   : > { %2223 = vmatprep.subr.msk.bf16.mxu1 %vm340_vm0, %v1886_v24  ;;  %v1286_v24 = vshll.u32 %v2677_v52, 16  ;;  %v1283_v17 = vor.u32 %v1282_v5, %v2691_v57  ;;  %v1315_v19 = vshrl.u32 %v1958_v0, 16  ;;  %v547_v21 = vrot.slane %v2536_v45, 5  ;;  %v2735_v16 = vld [vmem:[%s2439_s5 + $0x38] sm:$0x1] }
  0x42   : > { %2121 = vmatmul.mubr.msk.bf16.gmra.mrb[4].mxu0 %vm327_vm3, %v1928_v44  ;;  %v1293_v23 = vrot.slane %v1291_v59, 4  ;;  %v1296_v10 = vrot.slane %v1294_v62, 5  ;;  %v1318_v46 = vshll.u32 %v1958_v0, 16  ;;  %v544_v28 = vsel %vm2563_vm7, %v542_v4, %v543_v60 }
  0x43   : > { %2126 = vmatprep.mubr.msk.bf16.mxu0 %vm327_vm3, %v2275_v42  ;;  %v1274_v7 = vrot.slane %v1273_v6, 4  ;;  %v2716_v32 = vrot.slane %v1300_v9, 5  ;;  %v1306_v33 = vrot.slane %v1304_v11, 4  ;;  %v1869_v45 = vcombine.low %v2689_v25, %v537_v2  ;;  %v2278_v6 = vld [vmem:[%s2439_s5 + $0x3c] sm:$0xff]   ;;  %v2758_v11 = vld [vmem:[%s2439_s5 + $0x44] sm:$0x1] }
  0x44   : > { %v1284_v34 = vrot.slane %v1283_v17, 4  ;;  %v1288_v37 = vrot.slane %v1286_v24, 5  ;;  %v550_v13 = vrot.slane %v2544_v51, 5  ;;  %v1317_v44 = vrot.slane %v1315_v19, 4 }
  0x45   : > { %v1320_v8 = vrot.slane %v1318_v46, 5  ;;  %v1328_v39 = vshrl.u32 %v2706_v18, 16  ;;  %v1870_v15 = vcombine.low %v541_v12, %v544_v28  ;;  %v549_v42 = vrot.slane %v547_v21, 4 }
  0x46   : > { %v1297_v38 = vor.u32 %v1296_v10, %v1293_v23  ;;  %v1310_v60 = vshll.u32 %v2714_v31, 16  ;;  %v1279_v51 = vsel %vm2470_vm4, %v1274_v7, %v2691_v57  ;;  %v1307_v20 = vor.u32 %v1306_v33, %v2716_v32 }
  0x47   : > { %2081 = vmatmul.mubr.msk.bf16.gmra.mrb[4].mxu1 %vm327_vm3, %v1858_v40  ;;  %v1324_v40 = vshll.u32 %v2706_v18, 16  ;;  %v1330_v58 = vrot.slane %v1328_v39, 4  ;;  %v1289_v54 = vsel %vm2470_vm4, %v1284_v34, %v1288_v37  ;;  %v1339_v55 = vshrl.u32 %v1961_v43, 16  ;;  %v1973_v37 = vld [vmem:[%s2439_s5 + $0x18] sm:$0xe] }
  0x48   : > { %2086 = vmatprep.mubr.msk.bf16.mxu1 %vm327_vm3, %v1868_v63  ;;  %v1342_v25 = vshll.u32 %v1961_v43, 16  ;;  %v1348_v59 = vshll.u32 %v2726_v47, 16  ;;  %v1321_v57 = vor.u32 %v1320_v8, %v1317_v44  ;;  %v1334_v0 = vshll.u32 %v2735_v16, 16 }
  0x49   : > { %v1326_v61 = vrot.slane %v1324_v40, 5  ;;  %v1352_v2 = vshrl.u32 %v2726_v47, 16  ;;  %v1298_v4 = vrot.slane %v1297_v38, 4  ;;  %v551_v5 = vsel %vm2563_vm7, %v549_v42, %v550_v13 }
  0x4a   : > { %2127 = vmatmul.mubr.msk.bf16.vlgmr.msra.gmra.mrb[0].mxu0 %vm327_vm3, %v2276_v27  ;;  %v1965_v63 = vcombine.low %v1279_v51, %v1289_v54  ;;  %v1308_v24 = vrot.slane %v1307_v20, 4  ;;  %v1312_v9 = vrot.slane %v1310_v60, 5  ;;  %v1341_v12 = vrot.slane %v1339_v55, 4 }
  0x4b   : > { %2135 = vmatpush3.bf16.msra.mxu0 %v2638_v22  ;;  %2130 = vmatprep.mubr.msk.bf16.mxu0 %vm327_vm3, %v2277_v29  ;;  %v1331_v62 = vor.u32 %v1330_v58, %v1326_v61  ;;  %v548_v22 = vsel %vm2563_vm7, %v1866_v14, %v547_v21  ;;  %v1344_v17 = vrot.slane %v1342_v25, 5  ;;  %v2762_v14 = vrot.slane %v1348_v59, 5  ;;  %v1901_v21 = vld [vmem:[%s2439_s5 + $0x24] sm:$0xf] }
  0x4c   : > { %2229 = vmatprep.subr.msk.bf16.mxu0 %vm340_vm0, %v2731_v49  ;;  %v1354_v19 = vrot.slane %v1352_v2, 4  ;;  %v1322_v23 = vrot.slane %v1321_v57, 4  ;;  %v1336_v46 = vrot.slane %v1334_v0, 5  ;;  %v1871_v27 = vcombine.low %v548_v22, %v551_v5  ;;  %v1904_v57 = vld [vmem:[%s2439_s5 + $0x30] sm:$0xf]  ;;  %v2280_v0 = vld [vmem:[%s2439_s5 + $0x18] sm:$0xff]  }
  0x4d   : > { %v1332_v10 = vrot.slane %v1331_v62, 4  ;;  %v1313_v28 = vsel %vm2470_vm4, %v1308_v24, %v1312_v9  ;;  %v1358_v7 = vshll.u32 %v2758_v11, 16  ;;  %v1482_v33 = vrot.slane %v2660_v36, 5 }
  0x4e   : > { %v1345_v29 = vor.u32 %v1344_v17, %v1341_v12  ;;  %v1355_v34 = vor.u32 %v1354_v19, %v2762_v14  ;;  %v840_v40 = vshll.u32 %v1901_v21, 16  ;;  %v1327_v43 = vsel %vm2470_vm4, %v1322_v23, %v1326_v61  ;;  %v1975_v17 = vld [vmem:[%s2439_s5 + $0x30] sm:$0xe] }
  0x4f   : > { %2087 = vmatmul.mubr.msk.bf16.vlgmr.msra.gmra.mrb[0].mxu1 %vm327_vm3, %v1869_v45  ;;  %v837_v45 = vshrl.u32 %v1901_v21, 16  ;;  %v1337_v13 = vsel %vm2470_vm4, %v1332_v10, %v1336_v46  ;;  %v850_v36 = vshrl.u32 %v2584_v41, 16  ;;  %v1977_v42 = vrot.slane %v1973_v37, 9 }
  0x50   : > { %2095 = vmatpush3.bf16.msra.mxu1 %v2642_v26  ;;  %2090 = vmatprep.mubr.msk.bf16.mxu1 %vm327_vm3, %v1870_v15  ;;  %v1303_v26 = vsel %vm2470_vm4, %v1298_v4, %v2716_v32  ;;  %v846_v32 = vshll.u32 %v2584_v41, 16  ;;  %v842_v39 = vrot.slane %v840_v40, 5  ;;  %v1484_v38 = vrot.slane %v1482_v33, 4  ;;  %v2281_v4 = vld [vmem:[%s2439_s5 + $0x24] sm:$0xff]  }
  0x51   : > { %2225 = vmatprep.subr.msk.bf16.mxu1 %vm340_vm0, %v2413_v1  ;;  %v2279_v1 = vld [vmem:[%s2439_s5 + $0xc] sm:$0xff]   ;;  %v839_v44 = vrot.slane %v837_v45, 4  ;;  %v1966_v8 = vcombine.low %v1303_v26, %v1313_v28  ;;  %v1485_v60 = vrot.slane %v2677_v52, 5  ;;  %v852_v51 = vrot.slane %v850_v36, 4 }
  0x52   : > { %2131 = vmatmul.mubr.msk.bf16.gmra.mrb[4].mxu0 %vm327_vm3, %v2278_v6  ;;  %v848_v15 = vrot.slane %v846_v32, 5  ;;  %v1967_v20 = vcombine.low %v1327_v43, %v1337_v13  ;;  %v1346_v61 = vrot.slane %v1345_v29, 4  ;;  %v1356_v58 = vrot.slane %v1355_v34, 4  ;;  %v1974_v6 = vld [vmem:[%s2439_s5 + $0x24] sm:$0xe] }
  0x53   : > { %2136 = vmatprep.mubr.msk.bf16.mxu0 %vm327_vm3, %v1965_v63  ;;  %v1360_v54 = vrot.slane %v1358_v7, 5  ;;  %v1535_v41 = vsel %vm340_vm0, %v2731_v49, 0  ;;  %v843_v55 = vor.u32 %v842_v39, %v839_v44  ;;  %v856_v59 = vshll.u32 %v2593_v48, 16  ;;  %v1976_v43 = vld [vmem:[%s2439_s5 + $0x3c] sm:$0xe] }
  0x54   : > { %v853_v25 = vor.u32 %v852_v51, %v848_v15  ;;  %v870_v62 = vshll.u32 %v2596_v50, 16  ;;  %v874_v52 = vshrl.u32 %v2596_v50, 16  ;;  %v1483_v2 = vsel %vm2563_vm7, %v1977_v42, %v1482_v33 }
  0x55   : > { %v1486_v49 = vsel %vm2563_vm7, %v1484_v38, %v1485_v60  ;;  %v1489_v22 = vrot.slane %v2685_v56, 5  ;;  %v1351_v48 = vsel %vm2470_vm4, %v1346_v61, %v2762_v14  ;;  %v1361_v50 = vsel %vm2470_vm4, %v1356_v58, %v1360_v54 }
  0x56   : > { %v861_v5 = vshrl.u32 %v1904_v57, 16  ;;  %v864_v63 = vshll.u32 %v1904_v57, 16  ;;  %v844_v24 = vrot.slane %v843_v55, 4  ;;  %v854_v9 = vrot.slane %v853_v25, 4 }
  0x57   : > { %2091 = vmatmul.mubr.msk.bf16.gmra.mrb[4].mxu1 %vm327_vm3, %v1871_v27  ;;  %v858_v12 = vrot.slane %v856_v59, 5  ;;  %v1496_v56 = vrot.slane %v2706_v18, 5  ;;  %v872_v19 = vrot.slane %v870_v62, 5  ;;  %v876_v21 = vrot.slane %v874_v52, 4 }
  0x58   : > { %2096 = vmatprep.mubr.msk.bf16.mxu1 %vm327_vm3, %v2279_v1  ;;  %v1968_v23 = vcombine.low %v1351_v48, %v1361_v50  ;;  %v1978_v10 = vrot.slane %v1974_v6, 9  ;;  %v1491_v14 = vrot.slane %v1489_v22, 4  ;;  %v1492_v46 = vrot.slane %v2714_v31, 5 }
  0x59   : > { %v1982_v27 = vcombine.low %v1483_v2, %v1486_v49  ;;  %v1979_v26 = vrot.slane %v1975_v17, 9  ;;  %v863_v28 = vrot.slane %v861_v5, 4  ;;  %v866_v7 = vrot.slane %v864_v63, 5 }
  0x5a   : > { %2137 = vmatmul.mubr.msk.bf16.vlgmr.msra.gmra.mrb[0].mxu0 %vm327_vm3, %v1966_v8  ;;  %v849_v18 = vsel %vm2470_vm4, %v844_v24, %v848_v15  ;;  %v859_v33 = vsel %vm2470_vm4, %v854_v9, %v858_v12  ;;  %v1498_v45 = vrot.slane %v1496_v56, 4  ;;  %v1499_v1 = vrot.slane %v2735_v16, 5 }
  0x5b   : > { %2145 = vmatpush3.bf16.msra.mxu0 %v1535_v41  ;;  %2140 = vmatprep.mubr.msk.bf16.mxu0 %vm327_vm3, %v1967_v20  ;;  %v877_v29 = vor.u32 %v876_v21, %v872_v19  ;;  %v880_v31 = vshll.u32 %v2603_v53, 16  ;;  %v1490_v34 = vsel %vm2563_vm7, %v1978_v10, %v1489_v22  ;;  %v1493_v37 = vsel %vm2563_vm7, %v1491_v14, %v1492_v46 }
  0x5c   : > { %v1910_v40 = vcombine.low %v849_v18, %v859_v33  ;;  %v867_v32 = vor.u32 %v866_v7, %v863_v28  ;;  %v1503_v13 = vrot.slane %v2726_v47, 5  ;;  %v1497_v16 = vsel %vm2563_vm7, %v1979_v26, %v1496_v56 }
  0x5d   : > { %v1500_v53 = vsel %vm2563_vm7, %v1498_v45, %v1499_v1  ;;  %v878_v44 = vrot.slane %v877_v29, 4  ;;  %v882_v36 = vrot.slane %v880_v31, 5  ;;  %v1983_v8 = vcombine.low %v1490_v34, %v1493_v37 }
  0x5e   : > { %v1980_v39 = vrot.slane %v1976_v43, 9  ;;  %v1984_v15 = vcombine.low %v1497_v16, %v1500_v53  ;;  %v868_v42 = vrot.slane %v867_v32, 4  ;;  %v1505_v38 = vrot.slane %v1503_v13, 4 }
  0x5f   : > { %2097 = vmatmul.mubr.msk.bf16.vlgmr.msra.gmra.mrb[0].mxu1 %vm327_vm3, %v2280_v0  ;;  %v1506_v60 = vrot.slane %v2758_v11, 5  ;;  %v883_v51 = vsel %vm2470_vm4, %v878_v44, %v882_v36 }
  0x60   : > { %2155 = vmatpush3.bf16.msra.mxu1 %v2421_v3  ;;  %2100 = vmatprep.mubr.msk.bf16.mxu1 %vm327_vm3, %v2281_v4  ;;  %v2282_v3 = vld [vmem:[%s2439_s5 + $0x30] sm:$0xff]   ;;  %v873_v47 = vsel %vm2470_vm4, %v868_v42, %v872_v19  ;;  %v1504_v20 = vsel %vm2563_vm7, %v1980_v39, %v1503_v13  ;;  %s194_s5 = scalar_lea.vmem %s2918_s3, %s1842_s30 }
  0x61   : > { %v1507_v61 = vsel %vm2563_vm7, %v1505_v38, %v1506_v60  ;;  %v1911_v58 = vcombine.low %v873_v47, %v883_v51 }
  0x62   : > { %2141 = vmatmul.mubr.msk.bf16.gmra.mrb[4].mxu0 %vm327_vm3, %v1968_v23  ;;  %v1985_v54 = vcombine.low %v1504_v20, %v1507_v61 }
  0x63   : > { %2146 = vmatprep.mubr.msk.bf16.mxu0 %vm327_vm3, %v1982_v27 }
  0x67   : > { %2101 = vmatmul.mubr.msk.bf16.gmra.mrb[4].mxu1 %vm327_vm3, %v2282_v3 }
  0x68   : > { %2110 = vmatprep.mubr.msk.bf16.mxu1 %vm327_vm3, %v1910_v40 }
  0x6a   : > { %2147 = vmatmul.mubr.msk.bf16.vlgmr.msra.gmra.mrb[0].mxu0 %vm327_vm3, %v1983_v8 }
  0x6b   : > { %2150 = vmatprep.mubr.msk.bf16.mxu0 %vm327_vm3, %v1984_v15 }
  0x72   : > { %2151 = vmatmul.mubr.msk.bf16.gmra.mrb[4].mxu0 %vm327_vm3, %v1985_v54 }
  0x73   : > { %2111 = vmatmul.mubr.msk.bf16.vlgmr.msra.gmra.mrb[4].mxu1 %vm327_vm3, %v1911_v58 }
 0x132   : > { %v2098_v11 = vpop.f32.mrb[0].mxu1 }
 0x133   : > { %v737_v41 = vpop.f32.mrb[1].mxu1 }
 0x134   : > { %v2099_v55 = vpop.f32.mrb[2].mxu1 }
 0x135   : > { %v740_v25 = vpop.f32.mrb[3].mxu1 }
 0x13d   : > { %v2148_v59 = vpop.f32.mrb[0].mxu0 }
 0x13e   : > { %v2156_v57 = vadd.f32 %v2148_v59, %v2098_v11  ;;  %v1571_v62 = vpop.f32.mrb[1].mxu0 }
 0x13f   : > { %v2157_v52 = vadd.f32 %v1571_v62, %v737_v41  ;;  %v2149_v0 = vpop.f32.mrb[2].mxu0 }
 0x140   : > { %v1617_v2 = vmul.f32 %v2156_v57, %v1990_v30  ;;  %v2158_v49 = vadd.f32 %v2149_v0, %v2099_v55  ;;  %v1574_v22 = vpop.f32.mrb[3].mxu0 }
 0x141   : > { %v1615_v48 = vmul.f32 %v2157_v52, %v1990_v30  ;;  %v2159_v50 = vadd.f32 %v1574_v22, %v740_v25 }
 0x142   : > { %v2855_v4 = vadd.f32 %v1991_v35, %v1617_v2  ;;  %v1618_v6 = vmul.f32 %v2158_v49, %v1990_v30 }
 0x143   : > { %v2857_v5 = vadd.f32 %v1991_v35, %v1615_v48  ;;  %v1616_v63 = vmul.f32 %v2159_v50, %v1990_v30 }
 0x144   : > { %v1994_v24 = vmul.f32 -1.442695, %v2855_v4  ;;  %v2860_v9 = vadd.f32 %v1991_v35, %v1618_v6 }
 0x145   : > { %v1992_v12 = vmul.f32 -1.442695, %v2857_v5  ;;  %v2863_v17 = vadd.f32 %v1991_v35, %v1616_v63  ;;  %v2152_v19 = vpop.f32.mrb[4].mxu0 }
 0x146   : > { %v2112_v56 = vpop.f32.mrb[4].mxu1  ;;  %2283 = vpow2.f32 %v1994_v24  ;;  %v1995_v21 = vmul.f32 -1.442695, %v2860_v9  ;;  %v1587_v14 = vpop.f32.mrb[5].mxu0 }
 0x147   : > { %v2160_v23 = vadd.f32 %v2152_v19, %v2112_v56  ;;  %v963_v10 = vpop.f32.mrb[5].mxu1  ;;  %2285 = vpow2.f32 %v1992_v12  ;;  %v1993_v46 = vmul.f32 -1.442695, %v2863_v17  ;;  %v2153_v28 = vpop.f32.mrb[6].mxu0 }
 0x148   : > { %v2161_v27 = vadd.f32 %v1587_v14, %v963_v10  ;;  %v2113_v26 = vpop.f32.mrb[6].mxu1  ;;  %2287 = vpow2.f32 %v1995_v21  ;;  %v1590_v45 = vpop.f32.mrb[7].mxu0 }
 0x149   : > { %v1621_v7 = vmul.f32 %v2160_v23, %v1990_v30  ;;  %v2162_v18 = vadd.f32 %v2153_v28, %v2113_v26  ;;  %v966_v33 = vpop.f32.mrb[7].mxu1  ;;  %2289 = vpow2.f32 %v1993_v46 }
 0x14a   : > { %v1619_v1 = vmul.f32 %v2161_v27, %v1990_v30  ;;  %v2163_v29 = vadd.f32 %v1590_v45, %v966_v33 }
 0x14b   : > { %v2867_v31 = vadd.f32 %v1991_v35, %v1621_v7  ;;  %v1622_v3 = vmul.f32 %v2162_v18, %v1990_v30 }
 0x14c   : > { %v2870_v34 = vadd.f32 %v1991_v35, %v1619_v1  ;;  %v1620_v37 = vmul.f32 %v2163_v29, %v1990_v30 }
 0x14d   : > { %v1998_v40 = vmul.f32 -1.442695, %v2867_v31  ;;  %v2873_v32 = vadd.f32 %v1991_v35, %v1622_v3 }
 0x14e   : > { %v1996_v43 = vmul.f32 -1.442695, %v2870_v34  ;;  %v2876_v13 = vadd.f32 %v1991_v35, %v1620_v37 }
 0x14f   : > { %2291 = vpow2.f32 %v1998_v40  ;;  %v1999_v16 = vmul.f32 -1.442695, %v2873_v32 }
 0x150   : > { %2293 = vpow2.f32 %v1996_v43  ;;  %v1997_v53 = vmul.f32 -1.442695, %v2876_v13  ;;  %v2284_v44 = vpop.eup %2283 }
 0x151   : > { %2295 = vpow2.f32 %v1999_v16  ;;  %v2286_v36 = vpop.eup %2285  ;;  %v1662_v8 = vadd.f32 1.0, %v2284_v44 }
 0x152   : > { %2297 = vpow2.f32 %v1997_v53  ;;  %v2288_v39 = vpop.eup %2287  ;;  %v1660_v15 = vadd.f32 1.0, %v2286_v36 }
 0x153   : > { %v2290_v42 = vpop.eup %2289  ;;  %2299 = vrcp.f32 %v1662_v8  ;;  %v1663_v38 = vadd.f32 1.0, %v2288_v39 }
 0x154   : > { %2301 = vrcp.f32 %v1660_v15  ;;  %v1661_v60 = vadd.f32 1.0, %v2290_v42 }
 0x155   : > { %2303 = vrcp.f32 %v1663_v38 }
 0x156   : > { %2305 = vrcp.f32 %v1661_v60 }
 0x159   : > { %v2292_v47 = vpop.eup %2291 }
 0x15a   : > { %v2294_v51 = vpop.eup %2293  ;;  %v1666_v20 = vadd.f32 1.0, %v2292_v47 }
 0x15b   : > { %v2296_v61 = vpop.eup %2295  ;;  %v1664_v58 = vadd.f32 1.0, %v2294_v51 }
 0x15c   : > { %v2298_v54 = vpop.eup %2297  ;;  %2307 = vrcp.f32 %v1666_v20  ;;  %v1667_v11 = vadd.f32 1.0, %v2296_v61 }
 0x15d   : > { %2309 = vrcp.f32 %v1664_v58  ;;  %v1665_v41 = vadd.f32 1.0, %v2298_v54  ;;  %v2300_v55 = vpop.eup %2299 }
 0x15e   : > { %2311 = vrcp.f32 %v1667_v11  ;;  %v2302_v25 = vpop.eup %2301  ;;  %v1686_v59 = vmul.f32 %v2300_v55, %v2855_v4 }
 0x15f   : > { %2313 = vrcp.f32 %v1665_v41  ;;  %v2304_v30 = vpop.eup %2303  ;;  %v1684_v57 = vmul.f32 %v2302_v25, %v2857_v5 }
 0x160   : > { %v2306_v62 = vpop.eup %2305  ;;  %v2013_v35 = vpack.c.bf16 %v1686_v59, %v1686_v59  ;;  %v1687_v52 = vmul.f32 %v2304_v30, %v2860_v9 }
 0x161   : > { %v2011_v0 = vpack.c.bf16 %v1684_v57, %v1684_v57  ;;  %v1685_v2 = vmul.f32 %v2306_v62, %v2863_v17 }
 0x162   : > { %1727 = vst.msk [vmem:[%s194_s5 + $0x8] sm:$0xf] %vm1724_vm8, %v2013_v35  ;;  %v2014_v49 = vpack.c.bf16 %v1687_v52, %v1687_v52 }
 0x163   : > { %1725 = vst.msk [vmem:[%s194_s5] sm:$0xf] %vm1724_vm8, %v2011_v0  ;;  %v2012_v22 = vpack.c.bf16 %v1685_v2, %v1685_v2 }
 0x164   : > { %1728 = vst.msk [vmem:[%s194_s5 + $0xc] sm:$0xf] %vm1724_vm8, %v2014_v49 }
 0x165   : > { %1726 = vst.msk [vmem:[%s194_s5 + $0x4] sm:$0xf] %vm1724_vm8, %v2012_v22 }
 0x166   : > { %v2308_v48 = vpop.eup %2307 }
 0x167   : > { %v2310_v50 = vpop.eup %2309  ;;  %v1690_v4 = vmul.f32 %v2308_v48, %v2867_v31 }
 0x168   : > { %v2312_v6 = vpop.eup %2311  ;;  %v1688_v5 = vmul.f32 %v2310_v50, %v2870_v34 }
 0x169   : > { %v2314_v63 = vpop.eup %2313  ;;  %v2017_v24 = vpack.c.bf16 %v1690_v4, %v1690_v4  ;;  %v1691_v9 = vmul.f32 %v2312_v6, %v2873_v32 }
 0x16a   : > { %v2015_v12 = vpack.c.bf16 %v1688_v5, %v1688_v5  ;;  %v1689_v17 = vmul.f32 %v2314_v63, %v2876_v13 }
 0x16b   : > { %1731 = vst.msk [vmem:[%s194_s5 + $0x18] sm:$0xf] %vm1724_vm8, %v2017_v24  ;;  %v2018_v56 = vpack.c.bf16 %v1691_v9, %v1691_v9 }
 0x16c   : > { %1729 = vst.msk [vmem:[%s194_s5 + $0x10] sm:$0xf] %vm1724_vm8, %v2015_v12  ;;  %v2016_v19 = vpack.c.bf16 %v1689_v17, %v1689_v17 }
 0x16d   : > { %1732 = vst.msk [vmem:[%s194_s5 + $0x1c] sm:$0xf] %vm1724_vm8, %v2018_v56 }
 0x16e   : > { %1730 = vst.msk [vmem:[%s194_s5 + $0x14] sm:$0xf] %vm1724_vm8, %v2016_v19 }
 0x16f PF: > { %s13_s16 = sadd.s32 1, %s2353_s16   ;;  %s2923_s12 = smov %s2345_s14 }
 0x170   : > { %p10_p7 = scmp.ge.s32.totalorder %s13_s16, 10   ;;  %s2924_s13 = smov %s2349_s15 }
 0x171   : > { %s2925_s14 = smov %s2928_s17  ;;  %s2926_s15 = smov %s2932_s18 }
 0x172   :  { %12 = sbr.rel (!%p10_p7) target bundleno = 3 (0x3), region = 73 }

</bundles_post_ra>
